<compile_context>
chip_gen: v5e
topology: v5e:2x2
jax: 0.10.0
libtpu: 0.0.40
codegen_flags: <defaults>
</compile_context>

<pallas_src>
import functools

import jax
import jax.numpy as jnp
from jax import lax
from jax.experimental import pallas as pl
from jax.experimental.pallas import tpu as pltpu

_LANE = 128


def _round_up(x, m):
    return (x + m - 1) // m * m


def _divisors(n):
    ds = set()
    i = 1
    while i * i <= n:
        if n % i == 0:
            ds.add(i)
            ds.add(n // i)
        i += 1
    return sorted(ds)


def _vmem_limits():
    """Generation-aware scoped-VMEM limit and per-step planning budget."""
    cap = 64 * 1024 * 1024
    try:
        cap = int(getattr(pltpu.get_tpu_info(), "vmem_capacity_bytes", cap))
    except Exception:  # not on TPU / API drift -> conservative default
        pass
    cap = max(cap, 32 * 1024 * 1024)
    limit = min(int(cap * 0.80), cap - (4 << 20))   # headroom for the compiler
    budget = int(cap * 0.45)                        # planning budget for blocks
    return limit, budget


# ----------------------------------------------------------------------------
# Conv 3x3 / stride 2 / pad 1  (in-kernel tap gather, bf16 MXU, f32 accum)
# ----------------------------------------------------------------------------
def _conv_kernel(main_ref, extra_ref, wa_ref, wb_ref, b_ref, o_ref, acc_ref,
                 *, th, wo, cin, cout_p):
    # main_ref : (TH, 2, WP2, 2*C) bf16 -- row-pairs TH*i .. TH*i+TH-1
    # extra_ref: (1,  2, WP2, 2*C) bf16 -- halo row-pair TH*(i+1)
    # wa_ref   : (3, 2*C, Cout_p)  bf16 -- kw=0 / kw=1 weights stacked along K
    # wb_ref   : (3,   C, Cout_p)  bf16 -- kw=2 weights
    # b_ref    : (1, Cout_p)       f32
    # o_ref    : (TH*Wo, Cout_p)   out dtype
    # acc_ref  : (TH*Wo, Cout_p)   f32 VMEM accumulator
    rows = th * wo
    mtop = (th - 1) * wo

    def tap(slab_2c, slab_c, kh):
        p = jnp.dot(slab_2c, wa_ref[kh], preferred_element_type=jnp.float32)
        return p + jnp.dot(slab_c, wb_ref[kh], preferred_element_type=jnp.float32)

    # kh = 0, 1: all TH output rows read row-pair t with parity kh.
    a0 = main_ref[:, 0, 0:wo, :].reshape(rows, 2 * cin)
    b0 = main_ref[:, 0, 1:wo + 1, 0:cin].reshape(rows, cin)
    acc_ref[...] = tap(a0, b0, 0)

    a1 = main_ref[:, 1, 0:wo, :].reshape(rows, 2 * cin)
    b1 = main_ref[:, 1, 1:wo + 1, 0:cin].reshape(rows, cin)
    acc_ref[...] += tap(a1, b1, 1)

    # kh = 2: output rows 0..TH-2 read pairs 1..TH-1 of the main block, the
    # last output row reads the halo pair (parity 0 in both cases).
    if th > 1:
        a2 = main_ref[1:th, 0, 0:wo, :].reshape(mtop, 2 * cin)
        b2 = main_ref[1:th, 0, 1:wo + 1, 0:cin].reshape(mtop, cin)
        acc_ref[0:mtop, :] += tap(a2, b2, 2)
    ah = extra_ref[0, 0, 0:wo, :]
    bh = extra_ref[0, 0, 1:wo + 1, 0:cin]
    acc_ref[mtop:rows, :] += tap(ah, bh, 2)

    # Single bias add and single lane-dense store per grid step.
    o_ref[...] = (acc_ref[...] + b_ref[...]).astype(o_ref.dtype)


def _pick_th(n, ho, wo, wp2, cin, cout_p, out_bytes, budget):
    """Row-tile height: >= 512 matmul rows if possible, VMEM-budgeted."""
    w_b = 9 * cin * cout_p * 2 + cout_p * 4          # single-copy weights + bias
    cands = []
    for th in _divisors(ho):
        if (th * wo) % 8 and th != ho:               # output-block sublane legality
            continue
        in_b = (th + 1) * 2 * wp2 * (2 * cin) * 2 * 2    # bf16 main+halo, dbl-buffered
        out_b = th * wo * cout_p * out_bytes * 2
        acc_b = th * wo * cout_p * 4
        if w_b + in_b + out_b + acc_b <= budget:
            cands.append(th)
    if not cands:
        return ho                                    # full-height block is always legal
    big = [t for t in cands if t * wo >= 512]
    # Smallest tile that still fills the MXU -> more grid steps for the DMA
    # pipeline / megacore; otherwise the largest tile that fits.
    return big[0] if big else cands[-1]


@jax.jit
def conv3x3_stride2_pallas(x_nchw, weight, bias):
    """3x3 conv, stride 2, padding 1. x: (N,C,H,W); weight: (Cout,C,3,3)."""
    N, C, H, W = x_nchw.shape
    Cout = weight.shape[0]
    Ho, Wo = (H + 1) // 2, (W + 1) // 2
    HP2, WP2 = Ho + 1, Wo + 1
    Cout_p = _round_up(Cout, _LANE)                  # lane-dense output stores
    out_dtype = x_nchw.dtype
    vmem_limit, vmem_budget = _vmem_limits()

    # NCHW -> NHWC, zero-pad to (2*Ho+2, 2*Wo+2), cast to bf16 (fused under jit).
    # TODO(synk): keep the surrounding model NHWC to drop these transposes --
    # they are the largest remaining HBM cost of this memory-bound op.
    x = jnp.transpose(x_nchw, (0, 2, 3, 1))
    xp = jnp.pad(x, ((0, 0), (1, 2 * Ho + 1 - H), (1, 2 * Wo + 1 - W), (0, 0)))
    xp = xp.astype(jnp.bfloat16)
    # Free reshape into (row-pair, row-parity, col-pair, col-parity*C) form.
    xr = xp.reshape(N, HP2, 2, WP2, 2 * C)

    # Weights: (Cout,C,3,3) -> (kh,kw,C,Cout_p) bf16; kw=0/1 stacked along K.
    wr = jnp.transpose(weight, (2, 3, 1, 0))
    wr = jnp.pad(wr, ((0, 0), (0, 0), (0, 0), (0, Cout_p - Cout))).astype(jnp.bfloat16)
    wa = jnp.concatenate([wr[:, 0], wr[:, 1]], axis=1)       # (3, 2C, Cout_p)
    wb = wr[:, 2]                                             # (3,  C, Cout_p)
    br = jnp.pad(bias.astype(jnp.float32), (0, Cout_p - Cout)).reshape(1, Cout_p)

    TH = _pick_th(N, Ho, Wo, WP2, C, Cout_p, jnp.dtype(out_dtype).itemsize,
                  vmem_budget)
    grid = (N, Ho // TH)
    kernel = functools.partial(_conv_kernel, th=TH, wo=Wo, cin=C, cout_p=Cout_p)

    out = pl.pallas_call(
        kernel,
        out_shape=jax.ShapeDtypeStruct((N, Ho * Wo, Cout_p), out_dtype),
        grid_spec=pltpu.PrefetchScalarGridSpec(
            num_scalar_prefetch=0,
            grid=grid,
            in_specs=[
                # Main row-pair block for this tile of output rows.
                pl.BlockSpec((None, TH, 2, WP2, 2 * C),
                             lambda n, i: (n, i, 0, 0, 0)),
                # One-row-pair halo (kh=2 tap of the last output row of the tile).
                pl.BlockSpec((None, 1, 2, WP2, 2 * C),
                             lambda n, i: (n, TH * (i + 1), 0, 0, 0)),
                # Constant operands: whole array resident in VMEM (single copy,
                # not double-buffered) -> more VMEM headroom for the row tile.
                pl.BlockSpec(memory_space=pltpu.MemorySpace.VMEM),   # wa
                pl.BlockSpec(memory_space=pltpu.MemorySpace.VMEM),   # wb
                pl.BlockSpec(memory_space=pltpu.MemorySpace.VMEM),   # bias
            ],
            out_specs=pl.BlockSpec((None, TH * Wo, Cout_p),
                                   lambda n, i: (n, i, 0)),
            scratch_shapes=[pltpu.VMEM((TH * Wo, Cout_p), jnp.float32)],
        ),
        compiler_params=pltpu.CompilerParams(
            dimension_semantics=("parallel", "parallel"),
            vmem_limit_bytes=vmem_limit),
    )(xr, xr, wa, wb, br)

    # TODO(synk): if the consumer tolerates NHWC / Cout_p-padded activations,
    # return `out` directly and skip the slice + transpose passes below.
    out = out[:, :, :Cout].reshape(N, Ho, Wo, Cout)
    return jnp.transpose(out, (0, 3, 1, 2))          # back to NCHW


# ----------------------------------------------------------------------------
# 2x2 average pool, stride 2 (NCHW end-to-end, one bf16 pooling matmul)
# ----------------------------------------------------------------------------
def _avgpool_kernel(x_ref, q_ref, o_ref):
    # x_ref: (TR, g*L) rows, each = g groups of [top image row | bottom image row]
    # q_ref: (g*L, g*Wo) block-diagonal 0.25-valued pooling matrix (bf16)
    o_ref[...] = jnp.dot(x_ref[...].astype(jnp.bfloat16), q_ref[...],
                         preferred_element_type=jnp.float32).astype(o_ref.dtype)


def _pick_group(r, wo):
    """Rows per super-row so the output lane width g*Wo is >= 128 (lane-dense)."""
    if wo >= 128:
        return 1
    best = 1
    for g in _divisors(r):
        if g * wo > 512:          # keep the pooling matrix small
            break
        best = g
        if g * wo >= 128:
            break
    return best


def _pick_rows(rows, bytes_per_row, budget):
    cands = [t for t in _divisors(rows) if t % 8 == 0 or t == rows]
    fitting = [t for t in cands if t * bytes_per_row <= budget]
    return max(fitting) if fitting else min(cands)


@jax.jit
def avgpool2x2_pallas(x_nchw):
    """2x2 average pool, stride 2. x: (N,C,H,W)."""
    N, C, H, W = x_nchw.shape
    Ho, Wo = H // 2, W // 2
    if H != 2 * Ho or W != 2 * Wo:     # PyTorch AvgPool2d floors trailing odd row/col
        # TODO(synk): this trim makes the reshape below a copy (odd sizes only).
        x_nchw = x_nchw[:, :, :2 * Ho, :2 * Wo]
    vmem_limit, vmem_budget = _vmem_limits()

    L = 4 * Wo                          # one output row = [top img row | bottom img row]
    R = N * C * Ho
    g = _pick_group(R, Wo)              # group rows so stores are lane-dense
    rows, Lg, Og = R // g, g * L, g * Wo
    xr = x_nchw.reshape(rows, Lg)       # free reshape of contiguous NCHW

    jcol = (jnp.arange(L) % (2 * Wo)) // 2
    q1 = ((jcol[:, None] == jnp.arange(Wo)[None, :]) * 0.25).astype(jnp.bfloat16)
    q = jnp.kron(jnp.eye(g, dtype=jnp.bfloat16), q1) if g > 1 else q1

    ib = jnp.dtype(x_nchw.dtype).itemsize
    bpr = 2 * Lg * ib + 2 * Og * ib     # double-buffered input + output per row
    TR = _pick_rows(rows, bpr, max(vmem_budget - q.size * 2, 1 << 20))

    out = pl.pallas_call(
        _avgpool_kernel,
        out_shape=jax.ShapeDtypeStruct((rows, Og), x_nchw.dtype),
        grid_spec=pltpu.PrefetchScalarGridSpec(
            num_scalar_prefetch=0,
            grid=(rows // TR,),
            in_specs=[
                pl.BlockSpec((TR, Lg), lambda i: (i, 0)),
                # Constant pooling matrix: whole-array VMEM resident.
                pl.BlockSpec(memory_space=pltpu.MemorySpace.VMEM),
            ],
            out_specs=pl.BlockSpec((TR, Og), lambda i: (i, 0)),
        ),
        compiler_params=pltpu.CompilerParams(
            dimension_semantics=("parallel",),
            vmem_limit_bytes=vmem_limit),
    )(xr, q)

    return out.reshape(N, C, Ho, Wo)


# ----------------------------------------------------------------------------
# Module-equivalent wrapper
# ----------------------------------------------------------------------------
class Downsample:
    """JAX/Pallas port of guided_diffusion Downsample (dims=2)."""

    def __init__(self, channels, use_conv, dims=2, out_channels=None, key=None):
        assert dims == 2  # TODO(synk): dims=1 and dims=3 (stride (1,2,2)) variants
        self.channels = channels
        self.out_channels = out_channels or channels
        self.use_conv = use_conv
        self.dims = dims
        if use_conv:
            if key is None:
                key = jax.random.PRNGKey(0)
            kw, kb = jax.random.split(key)
            fan_in = channels * 3 * 3
            bound = 1.0 / jnp.sqrt(float(fan_in))
            self.weight = jax.random.uniform(
                kw, (self.out_channels, channels, 3, 3),
                minval=-bound, maxval=bound, dtype=jnp.float32)
            self.bias = jax.random.uniform(
                kb, (self.out_channels,), minval=-bound, maxval=bound,
                dtype=jnp.float32)
        else:
            assert self.channels == self.out_channels

    def __call__(self, x):
        assert x.shape[1] == self.channels
        if self.use_conv:
            return conv3x3_stride2_pallas(x, self.weight, self.bias)
        return avgpool2x2_pallas(x)


# ----------------------------------------------------------------------------
# Demo / self-check
# ----------------------------------------------------------------------------
def _conv_ref(x, weight, bias):
    # Reference on the same bf16-rounded operands (kernel uses bf16 MXU inputs).
    xb = x.astype(jnp.bfloat16).astype(jnp.float32)
    wb = weight.astype(jnp.bfloat16).astype(jnp.float32)
    return lax.conv_general_dilated(
        xb, wb, window_strides=(2, 2), padding=((1, 1), (1, 1)),
        dimension_numbers=("NCHW", "OIHW", "NCHW"),
        precision=lax.Precision.HIGHEST,
    ) + bias[None, :, None, None]


def _check_conv(key, n, c, cout, h, w):
    kx, kw, kb = jax.random.split(key, 3)
    x = jax.random.normal(kx, (n, c, h, w), dtype=jnp.float32)
    weight = jax.random.normal(kw, (cout, c, 3, 3), dtype=jnp.float32) * 0.1
    bias = jax.random.normal(kb, (cout,), dtype=jnp.float32)
    y = jax.block_until_ready(conv3x3_stride2_pallas(x, weight, bias))
    ref = _conv_ref(x, weight, bias)
    assert y.shape == (n, cout, (h + 1) // 2, (w + 1) // 2), y.shape
    assert jnp.allclose(y, ref, rtol=2e-2, atol=2e-2), (
        float(jnp.max(jnp.abs(y - ref))))


def _check_pool(key, n, c, h, w):
    x = jax.random.normal(key, (n, c, h, w), dtype=jnp.float32)
    y = jax.block_until_ready(avgpool2x2_pallas(x))
    ho, wo = h // 2, w // 2
    ref = x[:, :, :2 * ho, :2 * wo].reshape(n, c, ho, 2, wo, 2).mean(axis=(3, 5))
    assert y.shape == (n, c, ho, wo), y.shape
    assert jnp.allclose(y, ref, rtol=2e-2, atol=2e-2), (
        float(jnp.max(jnp.abs(y - ref))))


if __name__ == "__main__":
    key = jax.random.PRNGKey(0)
    k1, k2, k3, k4, k5, k6 = jax.random.split(key, 6)

    # ---- Canonical small shape through the module wrapper ----
    N, C, H, W = 2, 4, 16, 16
    x = jax.random.normal(k1, (N, C, H, W), dtype=jnp.float32)

    ds_conv = Downsample(C, use_conv=True, dims=2, key=k2)
    y_conv = jax.block_until_ready(ds_conv(x))
    ref_conv = _conv_ref(x, ds_conv.weight, ds_conv.bias)
    assert y_conv.shape == (N, C, H // 2, W // 2)
    assert jnp.allclose(y_conv, ref_conv, rtol=2e-2, atol=2e-2), (
        float(jnp.max(jnp.abs(y_conv - ref_conv))))

    ds_pool = Downsample(C, use_conv=False, dims=2)
    y_pool = jax.block_until_ready(ds_pool(x))
    ref_pool = x.reshape(N, C, H // 2, 2, W // 2, 2).mean(axis=(3, 5))
    assert y_pool.shape == (N, C, H // 2, W // 2)
    assert jnp.allclose(y_pool, ref_pool, rtol=2e-2, atol=2e-2), (
        float(jnp.max(jnp.abs(y_pool - ref_pool))))

    # ---- Extra small-shape checks: odd H/W + Cout != C (padding / Cout-pad
    # paths), a taller map that exercises the inter-tile halo (TH < Ho), and
    # pool odd-trim / row-grouping paths. ----
    _check_conv(k3, 1, 8, 12, 11, 10)
    _check_conv(k4, 1, 8, 8, 64, 64)
    _check_pool(k5, 1, 3, 11, 10)
    _check_pool(k6, 2, 8, 32, 32)

    print("KERNEL_OK")
</pallas_src>

<mosaic_0001>
module attributes {stable_mosaic.version = 11 : i64} {
  func.func @_conv_kernel(%arg0: i32, %arg1: i32, %arg2: memref<1x8x2x9x8xbf16, #tpu.memory_space<vmem>>, %arg3: memref<1x1x2x9x8xbf16, #tpu.memory_space<vmem>>, %arg4: memref<3x8x128xbf16, #tpu.memory_space<vmem>>, %arg5: memref<3x4x128xbf16, #tpu.memory_space<vmem>>, %arg6: memref<1x128xf32, #tpu.memory_space<vmem>>, %arg7: memref<1x64x128xf32, #tpu.memory_space<vmem>>, %arg8: memref<64x128xf32, #tpu.memory_space<vmem>>) attributes {dimension_semantics = [#tpu.dimension_semantics<parallel>, #tpu.dimension_semantics<parallel>], iteration_bounds = array<i64: 2, 1>, scalar_prefetch = 0 : i64, scratch_operands = 1 : i64, tpu.core_type = #tpu.core_type<tc>, window_params = [{transform_indices = @transform_0, window_bounds = array<i64: 1, 8, 2, 9, 8>}, {transform_indices = @transform_1, window_bounds = array<i64: 1, 1, 2, 9, 8>}, {pipeline_mode = #tpu.pipeline_mode<synchronous>, transform_indices = @transform_2, window_bounds = array<i64: 3, 8, 128>}, {pipeline_mode = #tpu.pipeline_mode<synchronous>, transform_indices = @transform_3, window_bounds = array<i64: 3, 4, 128>}, {pipeline_mode = #tpu.pipeline_mode<synchronous>, transform_indices = @transform_4, window_bounds = array<i64: 1, 128>}, {transform_indices = @transform_5, window_bounds = array<i64: 1, 64, 128>}]} {
    %c0 = arith.constant 0 : index
    %c0_0 = arith.constant 0 : index
    %c0_1 = arith.constant 0 : index
    %c0_2 = arith.constant 0 : index
    %c0_3 = arith.constant 0 : index
    %0 = vector.load %arg2[%c0, %c0_0, %c0_1, %c0_2, %c0_3] : memref<1x8x2x9x8xbf16, #tpu.memory_space<vmem>>, vector<1x8x1x8x8xbf16>
    %1 = vector.shape_cast %0 : vector<1x8x1x8x8xbf16> to vector<8x8x8xbf16>
    %2 = vector.shape_cast %1 : vector<8x8x8xbf16> to vector<64x8xbf16>
    %c0_4 = arith.constant 0 : index
    %c0_5 = arith.constant 0 : index
    %c0_6 = arith.constant 0 : index
    %c1 = arith.constant 1 : index
    %c0_7 = arith.constant 0 : index
    %3 = vector.load %arg2[%c0_4, %c0_5, %c0_6, %c1, %c0_7] : memref<1x8x2x9x8xbf16, #tpu.memory_space<vmem>>, vector<1x8x1x8x4xbf16>
    %4 = vector.shape_cast %3 : vector<1x8x1x8x4xbf16> to vector<8x8x4xbf16>
    %5 = vector.shape_cast %4 : vector<8x8x4xbf16> to vector<64x4xbf16>
    %c0_8 = arith.constant 0 : index
    %c0_9 = arith.constant 0 : index
    %c0_10 = arith.constant 0 : index
    %6 = vector.load %arg4[%c0_8, %c0_9, %c0_10] : memref<3x8x128xbf16, #tpu.memory_space<vmem>>, vector<1x8x128xbf16>
    %7 = vector.shape_cast %6 : vector<1x8x128xbf16> to vector<8x128xbf16>
    %cst = arith.constant dense<0.000000e+00> : vector<64x128xf32>
    %8 = tpu.matmul %2, %7, %cst {dimension_numbers = #tpu.dot_dimension_numbers<[1], [0], [0], [1], [0, 0, 1, 1], [], []>} : vector<64x8xbf16>, vector<8x128xbf16>, vector<64x128xf32> -> vector<64x128xf32>
    %c0_11 = arith.constant 0 : index
    %c0_12 = arith.constant 0 : index
    %c0_13 = arith.constant 0 : index
    %9 = vector.load %arg5[%c0_11, %c0_12, %c0_13] : memref<3x4x128xbf16, #tpu.memory_space<vmem>>, vector<1x4x128xbf16>
    %10 = vector.shape_cast %9 : vector<1x4x128xbf16> to vector<4x128xbf16>
    %cst_14 = arith.constant dense<0.000000e+00> : vector<64x128xf32>
    %11 = tpu.matmul %5, %10, %cst_14 {dimension_numbers = #tpu.dot_dimension_numbers<[1], [0], [0], [1], [0, 0, 1, 1], [], []>} : vector<64x4xbf16>, vector<4x128xbf16>, vector<64x128xf32> -> vector<64x128xf32>
    %12 = arith.addf %8, %11 : vector<64x128xf32>
    %c0_15 = arith.constant 0 : index
    %c0_16 = arith.constant 0 : index
    %13 = vector.load %arg8[%c0_15, %c0_16] : memref<64x128xf32, #tpu.memory_space<vmem>>, vector<64x128xf32>
    tpu.vector_store %arg8[%c0_15, %c0_16], %12 {strides = array<i32>} : memref<64x128xf32, #tpu.memory_space<vmem>>, vector<64x128xf32>,
    %c0_17 = arith.constant 0 : index
    %c0_18 = arith.constant 0 : index
    %c1_19 = arith.constant 1 : index
    %c0_20 = arith.constant 0 : index
    %c0_21 = arith.constant 0 : index
    %14 = vector.load %arg2[%c0_17, %c0_18, %c1_19, %c0_20, %c0_21] : memref<1x8x2x9x8xbf16, #tpu.memory_space<vmem>>, vector<1x8x1x8x8xbf16>
    %15 = vector.shape_cast %14 : vector<1x8x1x8x8xbf16> to vector<8x8x8xbf16>
    %16 = vector.shape_cast %15 : vector<8x8x8xbf16> to vector<64x8xbf16>
    %c0_22 = arith.constant 0 : index
    %c0_23 = arith.constant 0 : index
    %c1_24 = arith.constant 1 : index
    %c1_25 = arith.constant 1 : index
    %c0_26 = arith.constant 0 : index
    %17 = vector.load %arg2[%c0_22, %c0_23, %c1_24, %c1_25, %c0_26] : memref<1x8x2x9x8xbf16, #tpu.memory_space<vmem>>, vector<1x8x1x8x4xbf16>
    %18 = vector.shape_cast %17 : vector<1x8x1x8x4xbf16> to vector<8x8x4xbf16>
    %19 = vector.shape_cast %18 : vector<8x8x4xbf16> to vector<64x4xbf16>
    %c0_27 = arith.constant 0 : index
    %c0_28 = arith.constant 0 : index
    %20 = vector.load %arg8[%c0_27, %c0_28] : memref<64x128xf32, #tpu.memory_space<vmem>>, vector<64x128xf32>
    %c1_29 = arith.constant 1 : index
    %c0_30 = arith.constant 0 : index
    %c0_31 = arith.constant 0 : index
    %21 = vector.load %arg4[%c1_29, %c0_30, %c0_31] : memref<3x8x128xbf16, #tpu.memory_space<vmem>>, vector<1x8x128xbf16>
    %22 = vector.shape_cast %21 : vector<1x8x128xbf16> to vector<8x128xbf16>
    %cst_32 = arith.constant dense<0.000000e+00> : vector<64x128xf32>
    %23 = tpu.matmul %16, %22, %cst_32 {dimension_numbers = #tpu.dot_dimension_numbers<[1], [0], [0], [1], [0, 0, 1, 1], [], []>} : vector<64x8xbf16>, vector<8x128xbf16>, vector<64x128xf32> -> vector<64x128xf32>
    %c1_33 = arith.constant 1 : index
    %c0_34 = arith.constant 0 : index
    %c0_35 = arith.constant 0 : index
    %24 = vector.load %arg5[%c1_33, %c0_34, %c0_35] : memref<3x4x128xbf16, #tpu.memory_space<vmem>>, vector<1x4x128xbf16>
    %25 = vector.shape_cast %24 : vector<1x4x128xbf16> to vector<4x128xbf16>
    %cst_36 = arith.constant dense<0.000000e+00> : vector<64x128xf32>
    %26 = tpu.matmul %19, %25, %cst_36 {dimension_numbers = #tpu.dot_dimension_numbers<[1], [0], [0], [1], [0, 0, 1, 1], [], []>} : vector<64x4xbf16>, vector<4x128xbf16>, vector<64x128xf32> -> vector<64x128xf32>
    %27 = arith.addf %23, %26 : vector<64x128xf32>
    %28 = arith.addf %20, %27 : vector<64x128xf32>
    %c0_37 = arith.constant 0 : index
    %c0_38 = arith.constant 0 : index
    %29 = vector.load %arg8[%c0_37, %c0_38] : memref<64x128xf32, #tpu.memory_space<vmem>>, vector<64x128xf32>
    tpu.vector_store %arg8[%c0_37, %c0_38], %28 {strides = array<i32>} : memref<64x128xf32, #tpu.memory_space<vmem>>, vector<64x128xf32>,
    %c0_39 = arith.constant 0 : index
    %c1_40 = arith.constant 1 : index
    %c0_41 = arith.constant 0 : index
    %c0_42 = arith.constant 0 : index
    %c0_43 = arith.constant 0 : index
    %30 = vector.load %arg2[%c0_39, %c1_40, %c0_41, %c0_42, %c0_43] : memref<1x8x2x9x8xbf16, #tpu.memory_space<vmem>>, vector<1x7x1x8x8xbf16>
    %31 = vector.shape_cast %30 : vector<1x7x1x8x8xbf16> to vector<7x8x8xbf16>
    %32 = vector.shape_cast %31 : vector<7x8x8xbf16> to vector<56x8xbf16>
    %c0_44 = arith.constant 0 : index
    %c1_45 = arith.constant 1 : index
    %c0_46 = arith.constant 0 : index
    %c1_47 = arith.constant 1 : index
    %c0_48 = arith.constant 0 : index
    %33 = vector.load %arg2[%c0_44, %c1_45, %c0_46, %c1_47, %c0_48] : memref<1x8x2x9x8xbf16, #tpu.memory_space<vmem>>, vector<1x7x1x8x4xbf16>
    %34 = vector.shape_cast %33 : vector<1x7x1x8x4xbf16> to vector<7x8x4xbf16>
    %35 = vector.shape_cast %34 : vector<7x8x4xbf16> to vector<56x4xbf16>
    %c0_49 = arith.constant 0 : index
    %c0_50 = arith.constant 0 : index
    %36 = vector.load %arg8[%c0_49, %c0_50] : memref<64x128xf32, #tpu.memory_space<vmem>>, vector<56x128xf32>
    %c2 = arith.constant 2 : index
    %c0_51 = arith.constant 0 : index
    %c0_52 = arith.constant 0 : index
    %37 = vector.load %arg4[%c2, %c0_51, %c0_52] : memref<3x8x128xbf16, #tpu.memory_space<vmem>>, vector<1x8x128xbf16>
    %38 = vector.shape_cast %37 : vector<1x8x128xbf16> to vector<8x128xbf16>
    %cst_53 = arith.constant dense<0.000000e+00> : vector<56x128xf32>
    %39 = tpu.matmul %32, %38, %cst_53 {dimension_numbers = #tpu.dot_dimension_numbers<[1], [0], [0], [1], [0, 0, 1, 1], [], []>} : vector<56x8xbf16>, vector<8x128xbf16>, vector<56x128xf32> -> vector<56x128xf32>
    %c2_54 = arith.constant 2 : index
    %c0_55 = arith.constant 0 : index
    %c0_56 = arith.constant 0 : index
    %40 = vector.load %arg5[%c2_54, %c0_55, %c0_56] : memref<3x4x128xbf16, #tpu.memory_space<vmem>>, vector<1x4x128xbf16>
    %41 = vector.shape_cast %40 : vector<1x4x128xbf16> to vector<4x128xbf16>
    %cst_57 = arith.constant dense<0.000000e+00> : vector<56x128xf32>
    %42 = tpu.matmul %35, %41, %cst_57 {dimension_numbers = #tpu.dot_dimension_numbers<[1], [0], [0], [1], [0, 0, 1, 1], [], []>} : vector<56x4xbf16>, vector<4x128xbf16>, vector<56x128xf32> -> vector<56x128xf32>
    %43 = arith.addf %39, %42 : vector<56x128xf32>
    %44 = arith.addf %36, %43 : vector<56x128xf32>
    %c0_58 = arith.constant 0 : index
    %c0_59 = arith.constant 0 : index
    %45 = vector.load %arg8[%c0_58, %c0_59] : memref<64x128xf32, #tpu.memory_space<vmem>>, vector<56x128xf32>
    tpu.vector_store %arg8[%c0_58, %c0_59], %44 {strides = array<i32>} : memref<64x128xf32, #tpu.memory_space<vmem>>, vector<56x128xf32>,
    %c0_60 = arith.constant 0 : index
    %c0_61 = arith.constant 0 : index
    %c0_62 = arith.constant 0 : index
    %c0_63 = arith.constant 0 : index
    %c0_64 = arith.constant 0 : index
    %46 = vector.load %arg3[%c0_60, %c0_61, %c0_62, %c0_63, %c0_64] : memref<1x1x2x9x8xbf16, #tpu.memory_space<vmem>>, vector<1x1x1x8x8xbf16>
    %47 = vector.shape_cast %46 : vector<1x1x1x8x8xbf16> to vector<8x8xbf16>
    %c0_65 = arith.constant 0 : index
    %c0_66 = arith.constant 0 : index
    %c0_67 = arith.constant 0 : index
    %c1_68 = arith.constant 1 : index
    %c0_69 = arith.constant 0 : index
    %48 = vector.load %arg3[%c0_65, %c0_66, %c0_67, %c1_68, %c0_69] : memref<1x1x2x9x8xbf16, #tpu.memory_space<vmem>>, vector<1x1x1x8x4xbf16>
    %49 = vector.shape_cast %48 : vector<1x1x1x8x4xbf16> to vector<8x4xbf16>
    %c56 = arith.constant 56 : index
    %c0_70 = arith.constant 0 : index
    %50 = vector.load %arg8[%c56, %c0_70] : memref<64x128xf32, #tpu.memory_space<vmem>>, vector<8x128xf32>
    %c2_71 = arith.constant 2 : index
    %c0_72 = arith.constant 0 : index
    %c0_73 = arith.constant 0 : index
    %51 = vector.load %arg4[%c2_71, %c0_72, %c0_73] : memref<3x8x128xbf16, #tpu.memory_space<vmem>>, vector<1x8x128xbf16>
    %52 = vector.shape_cast %51 : vector<1x8x128xbf16> to vector<8x128xbf16>
    %cst_74 = arith.constant dense<0.000000e+00> : vector<8x128xf32>
    %53 = tpu.matmul %47, %52, %cst_74 {dimension_numbers = #tpu.dot_dimension_numbers<[1], [0], [0], [1], [0, 0, 1, 1], [], []>} : vector<8x8xbf16>, vector<8x128xbf16>, vector<8x128xf32> -> vector<8x128xf32>
    %c2_75 = arith.constant 2 : index
    %c0_76 = arith.constant 0 : index
    %c0_77 = arith.constant 0 : index
    %54 = vector.load %arg5[%c2_75, %c0_76, %c0_77] : memref<3x4x128xbf16, #tpu.memory_space<vmem>>, vector<1x4x128xbf16>
    %55 = vector.shape_cast %54 : vector<1x4x128xbf16> to vector<4x128xbf16>
    %cst_78 = arith.constant dense<0.000000e+00> : vector<8x128xf32>
    %56 = tpu.matmul %49, %55, %cst_78 {dimension_numbers = #tpu.dot_dimension_numbers<[1], [0], [0], [1], [0, 0, 1, 1], [], []>} : vector<8x4xbf16>, vector<4x128xbf16>, vector<8x128xf32> -> vector<8x128xf32>
    %57 = arith.addf %53, %56 : vector<8x128xf32>
    %58 = arith.addf %50, %57 : vector<8x128xf32>
    %c56_79 = arith.constant 56 : index
    %c0_80 = arith.constant 0 : index
    %59 = vector.load %arg8[%c56_79, %c0_80] : memref<64x128xf32, #tpu.memory_space<vmem>>, vector<8x128xf32>
    tpu.vector_store %arg8[%c56_79, %c0_80], %58 {strides = array<i32>} : memref<64x128xf32, #tpu.memory_space<vmem>>, vector<8x128xf32>,
    %c0_81 = arith.constant 0 : index
    %c0_82 = arith.constant 0 : index
    %60 = vector.load %arg8[%c0_81, %c0_82] : memref<64x128xf32, #tpu.memory_space<vmem>>, vector<64x128xf32>
    %c0_83 = arith.constant 0 : index
    %c0_84 = arith.constant 0 : index
    %61 = vector.load %arg6[%c0_83, %c0_84] : memref<1x128xf32, #tpu.memory_space<vmem>>, vector<1x128xf32>
    %62 = vector.broadcast %61 : vector<1x128xf32> to vector<64x128xf32>
    %63 = arith.addf %60, %62 : vector<64x128xf32>
    %c0_85 = arith.constant 0 : index
    %c0_86 = arith.constant 0 : index
    %c0_87 = arith.constant 0 : index
    %64 = vector.load %arg7[%c0_85, %c0_86, %c0_87] : memref<1x64x128xf32, #tpu.memory_space<vmem>>, vector<1x64x128xf32>
    %65 = vector.shape_cast %64 : vector<1x64x128xf32> to vector<64x128xf32>
    %66 = vector.shape_cast %63 : vector<64x128xf32> to vector<1x64x128xf32>
    tpu.vector_store %arg7[%c0_85, %c0_86, %c0_87], %66 {strides = array<i32>} : memref<1x64x128xf32, #tpu.memory_space<vmem>>, vector<1x64x128xf32>,
    return
  }
  func.func @transform_0(%arg0: i32, %arg1: i32) -> (i32, i32, i32, i32, i32) {
    %c0_i32 = arith.constant 0 : i32
    %c0_i32_0 = arith.constant 0 : i32
    %c0_i32_1 = arith.constant 0 : i32
    %c0_i32_2 = arith.constant 0 : i32
    return %arg0, %arg1, %c0_i32, %c0_i32_0, %c0_i32_1 : i32, i32, i32, i32, i32
  }
  func.func @transform_1(%arg0: i32, %arg1: i32) -> (i32, i32, i32, i32, i32) {
    %c1_i32 = arith.constant 1 : i32
    %0 = arith.addi %arg1, %c1_i32 : i32
    %c8_i32 = arith.constant 8 : i32
    %1 = arith.muli %c8_i32, %0 : i32
    %c0_i32 = arith.constant 0 : i32
    %c0_i32_0 = arith.constant 0 : i32
    %c0_i32_1 = arith.constant 0 : i32
    %c0_i32_2 = arith.constant 0 : i32
    return %arg0, %1, %c0_i32, %c0_i32_0, %c0_i32_1 : i32, i32, i32, i32, i32
  }
  func.func @transform_2(%arg0: i32, %arg1: i32) -> (i32, i32, i32) {
    %c0_i32 = arith.constant 0 : i32
    %c0_i32_0 = arith.constant 0 : i32
    %c0_i32_1 = arith.constant 0 : i32
    %c0_i32_2 = arith.constant 0 : i32
    return %c0_i32, %c0_i32_0, %c0_i32_1 : i32, i32, i32
  }
  func.func @transform_3(%arg0: i32, %arg1: i32) -> (i32, i32, i32) {
    %c0_i32 = arith.constant 0 : i32
    %c0_i32_0 = arith.constant 0 : i32
    %c0_i32_1 = arith.constant 0 : i32
    %c0_i32_2 = arith.constant 0 : i32
    return %c0_i32, %c0_i32_0, %c0_i32_1 : i32, i32, i32
  }
  func.func @transform_4(%arg0: i32, %arg1: i32) -> (i32, i32) {
    %c0_i32 = arith.constant 0 : i32
    %c0_i32_0 = arith.constant 0 : i32
    %c0_i32_1 = arith.constant 0 : i32
    return %c0_i32, %c0_i32_0 : i32, i32
  }
  func.func @transform_5(%arg0: i32, %arg1: i32) -> (i32, i32, i32) {
    %c0_i32 = arith.constant 0 : i32
    %c0_i32_0 = arith.constant 0 : i32
    return %arg0, %arg1, %c0_i32 : i32, i32, i32
  }
}

</mosaic_0001>

<bundles_post_ra>
// kernel: conv3x3_stride2_pallas.1
= control target key start
LH: loop header
LB: loop body
LE: loop exit
PB: predicated region body
PF: predicated region fallthrough
CT: control target
= control target key end

     0   :  { %s1557_s18 = smov 0   ;;  %s1559_s19 = smov 0   ;;  %s1816_s0 = inlined_call_operand.vmem [shape: bf16[2,9,2,9,8], index: 0, kind: input, shape index: {}, may-alias: {0,1}]   ;;  %s1817_s1 = inlined_call_operand.vmem [shape: bf16[2,9,2,9,8], index: 1, kind: input, shape index: {}, may-alias: {0,1}]   ;;  %s1818_s2 = inlined_call_operand.vmem [shape: bf16[3,8,128], index: 2, kind: input, shape index: {}]   ;;  %s1819_s3 = inlined_call_operand.vmem [shape: bf16[3,4,128], index: 3, kind: input, shape index: {}]   ;;  %s1820_s4 = inlined_call_operand.vmem [shape: f32[1,128], index: 4, kind: input, shape index: {}]   ;;  %s1821_s5 = inlined_call_operand.vmem [shape: f32[2,64,128], index: 5, kind: output, shape index: {}]  }
   0x1   :  { %s1561_s20 = smov 0  }
   0x2 LB: > { %s27_s21 = sadd.s32 1, %s1521_s19  ;;  %p1341_p0 = scmp.ge.s32.totalorder %s1525_s20, 1  ;;  %s1525_s20 = sphi %s1561_s20, %s15_s20   ;;  %s1521_s19 = sphi %s1559_s19, %s1825_s19   ;;  %s1517_s18 = sphi %s1557_s18, %s1824_s18  }
   0x3   : > { %p29_p1 = scmp.ge.s32.totalorder %s27_s21, 2  ;;  %p245_p2 = scmp.lt.s32.totalorder %s1525_s20, 3 }
   0x5   : > { %s1827_s21 = smov (%p29_p1, %s27_s21), 0  ;;  %p246_p3 = pnand %p1341_p0, %p245_p2 }
   0x6   : > { %p306_p4 = scmp.lt.s32.totalorder (!%p246_p3), %s1517_s18, 1 }
   0x7   : > { %249 = sbr.rel (%p246_p3) target bundleno = 262 (0x106), region = 40 }
   0xc   : > { %v477_v0 = vld [vmem:[%s1818_s2] sm:$0xf]  ;;  %vm570_vm0 = vcmask 1043456   ;;  %vm504_vm1 = vcmask 1041408   ;;  %s1829_s18 = smov (!%p306_p4, %s1517_s18), 1  ;;  %vm557_vm2 = vcmask 64512  }
   0xd   : > { %v572_v1 = vsel %vm570_vm0, %v477_v0, 0  ;;  %v478_v2 = vld [vmem:[%s1819_s3] sm:$0x3]  ;;  %v1427_v4 = vld [vmem:[%s1819_s3 + $0x4] sm:$0x3]  ;;  %s1475_s7 = smul.u32 144, %s1829_s18 }
   0xe   : > { %581 = vmatpush.bf16.msra.mxu1 %v572_v1  ;;  %v506_v3 = vsel %vm504_vm1, %v478_v2, 0  ;;  %1474 = vmatpush.bf16.msra.mxu3 %v572_v1  ;;  %v1036_v5 = vsel %vm504_vm1, %v1427_v4, 0  ;;  %v1426_v6 = vld [vmem:[%s1818_s2 + $0x8] sm:$0xf]  ;;  %v1387_v7 = vld [vmem:[%s1819_s3 + $0x2] sm:$0x3] }
   0xf   : > { %515 = vmatpush.bf16.msra.mxu0 %v506_v3  ;;  %1473 = vmatpush.bf16.msra.mxu2 %v506_v3  ;;  %v1097_v8 = vsel %vm570_vm0, %v1426_v6, 0  ;;  %v777_v9 = vsel %vm504_vm1, %v1387_v7, 0  ;;  %v1386_v10 = vld [vmem:[%s1818_s2 + $0x4] sm:$0xf]  ;;  %s1607_s12 = scalar_lea.vmem %s1816_s0, %s1475_s7  ;;  %vm362_vm3 = vsmask.f32 3328 }
  0x10   : > { %v841_v11 = vsel %vm570_vm0, %v1386_v10, 0  ;;  %vm363_vm4 = vsmask.f32 7440  ;;  %v1352_v12 = vld [vmem:[%s1607_s12] sm:$0xf]  ;;  %vm491_vm5 = vcmask 31744  }
  0x11   : > { %v1461_v13 = vld [vmem:[%s1607_s12 + $0xc] sm:$0xf0]  ;;  %v346_v14 = vld [vmem:[%s1607_s12] sm:$0xf]  ;;  %v354_v17 = vld [vmem:[%s1607_s12 + $0x4] sm:$0x1] }
  0x12   : > { %1106 = vmatpush.bf16.msrb.mxu1 %v1097_v8  ;;  %850 = vmatpush.bf16.msrb.mxu3 %v841_v11  ;;  %v1353_v15 = vor.u32 %v1461_v13, %v1352_v12  ;;  %v347_v16 = vld [vmem:[%s1607_s12 + $0x10] sm:$0xf]  ;;  %v355_v18 = vld [vmem:[%s1607_s12 + $0x14] sm:$0x1]  ;;  %v366_v19 = vshrl.u32 %v346_v14, 16  ;;  %v369_v20 = vshll.u32 %v346_v14, 16  ;;  %vm1624_vm6 = vmor %vm362_vm3, %vm363_vm4 }
  0x13   : > { %1045 = vmatpush.bf16.msrb.mxu0 %v1036_v5  ;;  %786 = vmatpush.bf16.msrb.mxu2 %v777_v9  ;;  %v375_v21 = vshll.u32 %v354_v17, 16  ;;  %v380_v22 = vshrl.u32 %v347_v16, 16  ;;  %v352_v23 = vld [vmem:[%s1607_s12 + $0x60] sm:$0xf]  ;;  %v383_v24 = vshll.u32 %v347_v16, 16  ;;  %v389_v25 = vshll.u32 %v355_v18, 16 }
  0x14   : > { %1366 = vmatmul.msk.bf16.vlgmr.msra.gmra.mxu1 %vm557_vm2, %v1353_v15  ;;  %v353_v26 = vld [vmem:[%s1607_s12 + $0x70] sm:$0xf]  ;;  %v360_v27 = vld [vmem:[%s1607_s12 + $0x64] sm:$0x1]  ;;  %v368_v28 = vrot.slane %v366_v19, 4  ;;  %v371_v29 = vrot.slane %v369_v20, 5 }
  0x15   : > { %v377_v30 = vrot.slane %v375_v21, 5  ;;  %v382_v31 = vrot.slane %v380_v22, 4  ;;  %v361_v32 = vld [vmem:[%s1607_s12 + $0x74] sm:$0x1]  ;;  %v385_v33 = vrot.slane %v383_v24, 5  ;;  %v391_v34 = vrot.slane %v389_v25, 5 }
  0x16   : > { %v450_v35 = vshrl.u32 %v352_v23, 16  ;;  %v453_v36 = vshll.u32 %v352_v23, 16  ;;  %v1364_v37 = vld [vmem:[%s1607_s12 + $0x60] sm:$0xf]  ;;  %v372_v38 = vor.u32 %v371_v29, %v368_v28  ;;  %v459_v39 = vshll.u32 %v360_v27, 16  ;;  %s1459_s17 = sadd.s32 128, %s1475_s7 }
  0x17   : > { %v464_v40 = vshrl.u32 %v353_v26, 16  ;;  %v467_v41 = vshll.u32 %v353_v26, 16  ;;  %v1464_v42 = vld [vmem:[%s1607_s12 + $0x6c] sm:$0xf0]  ;;  %v386_v44 = vor.u32 %v385_v33, %v382_v31  ;;  %v473_v47 = vshll.u32 %v361_v32, 16  ;;  %s332_s24 = scalar_lea.vmem %s1817_s1, %s1459_s17  ;;  %s1460_s25 = sshll.u32 %s1829_s18, 6 }
  0x18   : > { %v452_v45 = vrot.slane %v450_v35, 4  ;;  %v455_v46 = vrot.slane %v453_v36, 5  ;;  %v1356_v48 = vld [vmem:[%s1607_s12 + $0x20] sm:$0xf]  ;;  %v373_v49 = vrot.slane %v372_v38, 4  ;;  %v461_v50 = vrot.slane %v459_v39, 5  ;;  %s1785_s30 = scalar_lea.vmem %s1821_s5, %s1460_s25 }
  0x19   : > { %v466_v51 = vrot.slane %v464_v40, 4  ;;  %v469_v52 = vrot.slane %v467_v41, 5  ;;  %v1462_v53 = vld [vmem:[%s1607_s12 + $0x2c] sm:$0xf0]  ;;  %v387_v54 = vrot.slane %v386_v44, 4  ;;  %v475_v56 = vrot.slane %v473_v47, 5 }
  0x1a   : > { %v456_v55 = vor.u32 %v455_v46, %v452_v45  ;;  %v1365_v57 = vor.u32 %v1464_v42, %v1364_v37  ;;  %v348_v58 = vld [vmem:[%s1607_s12 + $0x20] sm:$0xf]  ;;  %v378_v59 = vsel %vm1624_vm6, %v373_v49, %v377_v30  ;;  %v1357_v61 = vor.u32 %v1462_v53, %v1356_v48  ;;  %v349_v62 = vld [vmem:[%s1607_s12 + $0x30] sm:$0xf]  ;;  %v356_v63 = vld [vmem:[%s1607_s12 + $0x24] sm:$0x1] }
  0x1b   : > { %v470_v60 = vor.u32 %v469_v52, %v466_v51  ;;  %v394_v0 = vshrl.u32 %v348_v58, 16  ;;  %v392_v1 = vsel %vm1624_vm6, %v387_v54, %v391_v34  ;;  %v479_v2 = vunpack.c.l.b16 %v378_v59  ;;  %v357_v4 = vld [vmem:[%s1607_s12 + $0x34] sm:$0x1]  ;;  %v1370_v10 = vld [vmem:[%s1607_s12 + $0x8] sm:$0xf] }
  0x1c   : > { %v457_v3 = vrot.slane %v456_v55, 4  ;;  %1369 = vmatmul.msk.bf16.vlgmr.msra.gmra.mxu3 %vm557_vm2, %v1365_v57  ;;  %v397_v5 = vshll.u32 %v348_v58, 16  ;;  %v480_v6 = vunpack.c.l.b16 %v392_v1  ;;  %v403_v9 = vshll.u32 %v356_v63, 16  ;;  %v1378_v15 = vld [vmem:[%s1607_s12 + $0xc] sm:$0x1] }
  0x1d   : > { %v471_v7 = vrot.slane %v470_v60, 4  ;;  %v396_v8 = vrot.slane %v394_v0, 4  ;;  %v408_v13 = vshrl.u32 %v349_v62, 16  ;;  %v411_v14 = vshll.u32 %v349_v62, 16  ;;  %v1371_v20 = vld [vmem:[%s1607_s12 + $0x18] sm:$0xf] }
  0x1e   : > { %v462_v11 = vsel %vm1624_vm6, %v457_v3, %v461_v50  ;;  %v399_v12 = vrot.slane %v397_v5, 5  ;;  %v487_v16 = vpack.c.b16 %v480_v6, %v479_v2  ;;  %v405_v19 = vrot.slane %v403_v9, 5  ;;  %v1379_v26 = vld [vmem:[%s1607_s12 + $0x1c] sm:$0x1]  ;;  %v1394_v34 = vld [vmem:[%s1607_s12 + $0x8] sm:$0xf] }
  0x1f   : > { %v476_v17 = vsel %vm1624_vm6, %v471_v7, %v475_v56  ;;  %v485_v18 = vunpack.c.l.b16 %v462_v11  ;;  %v410_v23 = vrot.slane %v408_v13, 4  ;;  %v413_v24 = vrot.slane %v411_v14, 5  ;;  %v1465_v35 = vld [vmem:[%s1607_s12 + $0x14] sm:$0xf0]  ;;  %v1449_v39 = vld [vmem:[%s1819_s3 + $0x4] sm:$0x3] }
  0x20   : > { %v486_v21 = vunpack.c.l.b16 %v476_v17  ;;  %v400_v22 = vor.u32 %v399_v12, %v396_v8  ;;  %1346 = vmatmul.msk.bf16.vlgmr.msra.gmra.mxu0 %vm491_vm5, %v487_v16  ;;  %v417_v25 = vshll.u32 %v357_v4, 16  ;;  %v629_v27 = vshrl.u32 %v1370_v10, 16  ;;  %v1448_v45 = vld [vmem:[%s1818_s2 + $0x8] sm:$0xf]  ;;  %v350_v49 = vld [vmem:[%s1607_s12 + $0x40] sm:$0xf] }
  0x21   : > { %v632_v28 = vshll.u32 %v1370_v10, 16  ;;  %v638_v29 = vshll.u32 %v1378_v15, 16  ;;  %v414_v32 = vor.u32 %v413_v24, %v410_v23  ;;  %v643_v33 = vshrl.u32 %v1371_v20, 16  ;;  %v351_v53 = vld [vmem:[%s1607_s12 + $0x50] sm:$0xf] }
  0x22   : > { %v490_v30 = vpack.c.b16 %v486_v21, %v485_v18  ;;  %v401_v31 = vrot.slane %v400_v22, 4  ;;  %v419_v36 = vrot.slane %v417_v25, 5  ;;  %v631_v37 = vrot.slane %v629_v27, 4  ;;  %v358_v60 = vld [vmem:[%s1607_s12 + $0x44] sm:$0x1] }
  0x23   : > { %v634_v38 = vrot.slane %v632_v28, 5  ;;  %v415_v41 = vrot.slane %v414_v32, 4  ;;  %v645_v42 = vrot.slane %v643_v33, 4  ;;  %v646_v44 = vshll.u32 %v1371_v20, 16  ;;  %v1372_v3 = vld [vmem:[%s1607_s12 + $0x28] sm:$0xf] }
  0x24   : > { %1349 = vmatmul.msk.bf16.vlgmr.msra.gmra.mxu2 %vm491_vm5, %v490_v30  ;;  %1367 = vmatmul.msk.bf16.gmra.mxu1 %vm557_vm2, %v1357_v61  ;;  %v406_v40 = vsel %vm1624_vm6, %v401_v31, %v405_v19  ;;  %v640_v47 = vrot.slane %v638_v29, 5  ;;  %v652_v48 = vshll.u32 %v1379_v26, 16  ;;  %v1162_v52 = vsel %vm504_vm1, %v1449_v39, 0  ;;  %v359_v5 = vld [vmem:[%s1607_s12 + $0x54] sm:$0x1] }
  0x25   : > { %v635_v46 = vor.u32 %v634_v38, %v631_v37  ;;  %v420_v50 = vsel %vm1624_vm6, %v415_v41, %v419_v36  ;;  %v648_v51 = vrot.slane %v646_v44, 5  ;;  %v481_v54 = vunpack.c.l.b16 %v406_v40  ;;  %1171 = vmatpush.bf16.msra.mxu2 %v1162_v52  ;;  %v1373_v12 = vld [vmem:[%s1607_s12 + $0x38] sm:$0xf]  ;;  %v1360_v14 = vld [vmem:[%s1607_s12 + $0x40] sm:$0xf] }
  0x26   : > { %v1395_v56 = vor.u32 %v1465_v35, %v1394_v34  ;;  %v1181_v57 = vsel %vm570_vm0, %v1448_v45, 0  ;;  %v654_v59 = vrot.slane %v652_v48, 5  ;;  %v422_v61 = vshrl.u32 %v350_v49, 16  ;;  %v1463_v15 = vld [vmem:[%s1607_s12 + $0x4c] sm:$0xf0] }
  0x27   : > { %v636_v55 = vrot.slane %v635_v46, 4  ;;  %v649_v58 = vor.u32 %v648_v51, %v645_v42  ;;  %1190 = vmatpush.bf16.msra.mxu3 %v1181_v57  ;;  %v425_v62 = vshll.u32 %v350_v49, 16  ;;  %v482_v63 = vunpack.c.l.b16 %v420_v50  ;;  %v1380_v22 = vld [vmem:[%s1607_s12 + $0x2c] sm:$0x1]  ;;  %v1381_v24 = vld [vmem:[%s1607_s12 + $0x3c] sm:$0x1] }
  0x28   : > { %v436_v1 = vshrl.u32 %v351_v53, 16  ;;  %v439_v2 = vshll.u32 %v351_v53, 16  ;;  %v424_v6 = vrot.slane %v422_v61, 4  ;;  %v431_v9 = vshll.u32 %v358_v60, 16  ;;  %v1398_v42 = vld [vmem:[%s1607_s12 + $0x28] sm:$0xf] }
  0x29   : > { %v641_v0 = vsel %vm1624_vm6, %v636_v55, %v640_v47  ;;  %v650_v4 = vrot.slane %v649_v58, 4  ;;  %v427_v7 = vrot.slane %v425_v62, 5  ;;  %v657_v17 = vshrl.u32 %v1372_v3, 16  ;;  %v1466_v44 = vld [vmem:[%s1607_s12 + $0x34] sm:$0xf0] }
  0x2a   : > { %v752_v8 = vunpack.c.l.b16 %v641_v0  ;;  %v438_v10 = vrot.slane %v436_v1, 4  ;;  %v441_v11 = vrot.slane %v439_v2, 5  ;;  %v660_v18 = vshll.u32 %v1372_v3, 16  ;;  %v1374_v47 = vld [vmem:[%s1607_s12 + $0x48] sm:$0xf] }
  0x2b   : > { %v655_v13 = vsel %vm1624_vm6, %v650_v4, %v654_v59  ;;  %v428_v16 = vor.u32 %v427_v7, %v424_v6  ;;  %v488_v19 = vpack.c.b16 %v482_v63, %v481_v54  ;;  %v445_v21 = vshll.u32 %v359_v5, 16  ;;  %v1412_v48 = vld [vmem:[%s1607_s12 + $0x10] sm:$0xf]  ;;  %v1375_v51 = vld [vmem:[%s1607_s12 + $0x58] sm:$0xf] }
  0x2c   : > { %1408 = vmatmul.msk.bf16.vlgmr.msrb.gmra.mxu3 %vm557_vm2, %v1395_v56  ;;  %v753_v20 = vunpack.c.l.b16 %v655_v13  ;;  %v442_v23 = vor.u32 %v441_v11, %v438_v10  ;;  %v659_v25 = vrot.slane %v657_v17, 4  ;;  %v662_v26 = vrot.slane %v660_v18, 5  ;;  %v1413_v54 = vld [vmem:[%s1607_s12 + $0x20] sm:$0xf]  ;;  %v1434_v3 = vld [vmem:[%s1607_s12 + $0x10] sm:$0xf] }
  0x2d   : > { %v671_v27 = vshrl.u32 %v1373_v12, 16  ;;  %v1361_v28 = vor.u32 %v1463_v15, %v1360_v14  ;;  %v429_v29 = vrot.slane %v428_v16, 4  ;;  %v433_v30 = vrot.slane %v431_v9, 5  ;;  %v1419_v4 = vld [vmem:[%s1607_s12 + $0x14] sm:$0x1] }
  0x2e   : > { %v674_v31 = vshll.u32 %v1373_v12, 16  ;;  %v760_v32 = vpack.c.b16 %v753_v20, %v752_v8  ;;  %v663_v33 = vor.u32 %v662_v26, %v659_v25  ;;  %v666_v34 = vshll.u32 %v1380_v22, 16  ;;  %v1420_v5 = vld [vmem:[%s1607_s12 + $0x24] sm:$0x1]  ;;  %v1469_v9 = vld [vmem:[%s1607_s12 + $0x1c] sm:$0xf0] }
  0x2f   : > { %v673_v35 = vrot.slane %v671_v27, 4  ;;  %v680_v37 = vshll.u32 %v1381_v24, 16  ;;  %v443_v38 = vrot.slane %v442_v23, 4  ;;  %v447_v39 = vrot.slane %v445_v21, 5  ;;  %v1382_v14 = vld [vmem:[%s1607_s12 + $0x4c] sm:$0x1] }
  0x30   : > { %1347 = vmatmul.msk.bf16.gmra.mxu0 %vm491_vm5, %v488_v19  ;;  %v676_v36 = vrot.slane %v674_v31, 5  ;;  %v434_v40 = vsel %vm1624_vm6, %v429_v29, %v433_v30  ;;  %v664_v45 = vrot.slane %v663_v33, 4  ;;  %v668_v46 = vrot.slane %v666_v34, 5  ;;  %v1383_v19 = vld [vmem:[%s1607_s12 + $0x5c] sm:$0x1] }
  0x31   : > { %v682_v50 = vrot.slane %v680_v37, 5  ;;  %v448_v52 = vsel %vm1624_vm6, %v443_v38, %v447_v39  ;;  %v483_v53 = vunpack.c.l.b16 %v434_v40  ;;  %v1399_v55 = vor.u32 %v1466_v44, %v1398_v42  ;;  %v1402_v34 = vld [vmem:[%s1607_s12 + $0x48] sm:$0xf] }
  0x32   : > { %v677_v41 = vor.u32 %v676_v36, %v673_v35  ;;  %v685_v56 = vshrl.u32 %v1374_v47, 16  ;;  %v688_v57 = vshll.u32 %v1374_v47, 16  ;;  %v904_v58 = vshrl.u32 %v1412_v48, 16  ;;  %v1414_v35 = vld [vmem:[%s1607_s12 + $0x30] sm:$0xf] }
  0x33   : > { %v669_v59 = vsel %vm1624_vm6, %v664_v45, %v668_v46  ;;  %v699_v60 = vshrl.u32 %v1375_v51, 16  ;;  %v702_v61 = vshll.u32 %v1375_v51, 16  ;;  %v907_v62 = vshll.u32 %v1412_v48, 16  ;;  %v1415_v36 = vld [vmem:[%s1607_s12 + $0x40] sm:$0xf] }
  0x34   : > { %1388 = vmatmul.msk.bf16.vlgmr.msrb.gmra.mxu2 %vm491_vm5, %v760_v32  ;;  %1368 = vmatmul.msk.bf16.gmra.mxu1 %vm557_vm2, %v1361_v28  ;;  %v678_v49 = vrot.slane %v677_v41, 4  ;;  %v484_v63 = vunpack.c.l.b16 %v448_v52  ;;  %v906_v1 = vrot.slane %v904_v58, 4  ;;  %v918_v2 = vshrl.u32 %v1413_v54, 16  ;;  %v1467_v41 = vld [vmem:[%s1607_s12 + $0x54] sm:$0xf0] }
  0x35   : > { %v909_v6 = vrot.slane %v907_v62, 5  ;;  %v921_v7 = vshll.u32 %v1413_v54, 16  ;;  %v754_v8 = vunpack.c.l.b16 %v669_v59  ;;  %v687_v10 = vrot.slane %v685_v56, 4  ;;  %v1376_v45 = vld [vmem:[%s1607_s12 + $0x68] sm:$0xf] }
  0x36   : > { %v683_v0 = vsel %vm1624_vm6, %v678_v49, %v682_v50  ;;  %v690_v11 = vrot.slane %v688_v57, 5  ;;  %v920_v12 = vrot.slane %v918_v2, 4  ;;  %v701_v15 = vrot.slane %v699_v60, 4  ;;  %v1377_v46 = vld [vmem:[%s1607_s12 + $0x78] sm:$0xf] }
  0x37   : > { %v755_v13 = vunpack.c.l.b16 %v683_v0  ;;  %v704_v16 = vrot.slane %v702_v61, 5  ;;  %v923_v17 = vrot.slane %v921_v7, 5  ;;  %v489_v18 = vpack.c.b16 %v484_v63, %v483_v53  ;;  %v1438_v0 = vld [vmem:[%s1607_s12 + $0x30] sm:$0xf]  ;;  %v1422_v2 = vld [vmem:[%s1607_s12 + $0x44] sm:$0x1] }
  0x38   : > { %v910_v20 = vor.u32 %v909_v6, %v906_v1  ;;  %v913_v21 = vshll.u32 %v1419_v4, 16  ;;  %v927_v22 = vshll.u32 %v1420_v5, 16  ;;  %v1435_v24 = vor.u32 %v1469_v9, %v1434_v3  ;;  %v1421_v1 = vld [vmem:[%s1607_s12 + $0x34] sm:$0x1]  ;;  %v1470_v5 = vld [vmem:[%s1607_s12 + $0x3c] sm:$0xf0] }
  0x39   : > { %v924_v23 = vor.u32 %v923_v17, %v920_v12  ;;  %v694_v25 = vshll.u32 %v1382_v14, 16  ;;  %v761_v26 = vpack.c.b16 %v755_v13, %v754_v8  ;;  %v691_v27 = vor.u32 %v690_v11, %v687_v10  ;;  %v1384_v6 = vld [vmem:[%s1607_s12 + $0x6c] sm:$0x1]  ;;  %v1385_v9 = vld [vmem:[%s1607_s12 + $0x7c] sm:$0x1] }
  0x3a   : > { %v705_v28 = vor.u32 %v704_v16, %v701_v15  ;;  %v708_v29 = vshll.u32 %v1383_v19, 16  ;;  %v911_v30 = vrot.slane %v910_v20, 4  ;;  %v915_v31 = vrot.slane %v913_v21, 5 }
  0x3b   : > { %v925_v32 = vrot.slane %v924_v23, 4  ;;  %v929_v33 = vrot.slane %v927_v22, 5  ;;  %v692_v37 = vrot.slane %v691_v27, 4  ;;  %v696_v38 = vrot.slane %v694_v25, 5  ;;  %v1416_v27 = vld [vmem:[%s1607_s12 + $0x50] sm:$0xf] }
  0x3c   : > { %1409 = vmatmul.msk.bf16.gmra.mxu3 %vm557_vm2, %v1399_v55  ;;  %v706_v39 = vrot.slane %v705_v28, 4  ;;  %v710_v40 = vrot.slane %v708_v29, 5  ;;  %v916_v42 = vsel %vm1624_vm6, %v911_v30, %v915_v31  ;;  %v932_v47 = vshrl.u32 %v1414_v35, 16  ;;  %v1417_v28 = vld [vmem:[%s1607_s12 + $0x60] sm:$0xf] }
  0x3d   : > { %v930_v44 = vsel %vm1624_vm6, %v925_v32, %v929_v33  ;;  %v935_v48 = vshll.u32 %v1414_v35, 16  ;;  %v946_v49 = vshrl.u32 %v1415_v36, 16  ;;  %v949_v50 = vshll.u32 %v1415_v36, 16  ;;  %v1406_v31 = vld [vmem:[%s1607_s12 + $0x68] sm:$0xf] }
  0x3e   : > { %v1403_v51 = vor.u32 %v1467_v41, %v1402_v34  ;;  %v697_v52 = vsel %vm1624_vm6, %v692_v37, %v696_v38  ;;  %v711_v53 = vsel %vm1624_vm6, %v706_v39, %v710_v40  ;;  %v713_v54 = vshrl.u32 %v1376_v45, 16  ;;  %v1468_v34 = vld [vmem:[%s1607_s12 + $0x74] sm:$0xf0] }
  0x3f   : > { %v716_v55 = vshll.u32 %v1376_v45, 16  ;;  %v1012_v56 = vunpack.c.l.b16 %v916_v42  ;;  %v1013_v57 = vunpack.c.l.b16 %v930_v44  ;;  %v727_v58 = vshrl.u32 %v1377_v46, 16 }
  0x40   : > { %1348 = vmatmul.msk.bf16.gmra.mxu0 %vm491_vm5, %v489_v18  ;;  %v730_v59 = vshll.u32 %v1377_v46, 16  ;;  %v934_v60 = vrot.slane %v932_v47, 4  ;;  %v937_v61 = vrot.slane %v935_v48, 5  ;;  %v948_v62 = vrot.slane %v946_v49, 4 }
  0x41   : > { %v951_v63 = vrot.slane %v949_v50, 5  ;;  %v756_v3 = vunpack.c.l.b16 %v697_v52  ;;  %v757_v4 = vunpack.c.l.b16 %v711_v53  ;;  %v715_v7 = vrot.slane %v713_v54, 4  ;;  %v1424_v52 = vld [vmem:[%s1607_s12 + $0x64] sm:$0x1] }
  0x42   : > { %v1019_v8 = vpack.c.b16 %v1013_v57, %v1012_v56  ;;  %v718_v10 = vrot.slane %v716_v55, 5  ;;  %v729_v11 = vrot.slane %v727_v58, 4  ;;  %v732_v12 = vrot.slane %v730_v59, 5  ;;  %v1442_v56 = vld [vmem:[%s1607_s12 + $0x50] sm:$0xf] }
  0x43   : > { %v938_v13 = vor.u32 %v937_v61, %v934_v60  ;;  %v941_v14 = vshll.u32 %v1421_v1, 16  ;;  %v952_v15 = vor.u32 %v951_v63, %v948_v62  ;;  %v955_v16 = vshll.u32 %v1422_v2, 16  ;;  %v1471_v57 = vld [vmem:[%s1607_s12 + $0x5c] sm:$0xf0]  ;;  %v1472_v1 = vld [vmem:[%s332_s24] sm:$0x10] }
  0x44   : > { %1389 = vmatmul.msk.bf16.gmra.mxu2 %vm491_vm5, %v761_v26  ;;  %1444 = vmatmul.msk.bf16.vlgmr.msrb.gmra.mxu1 %vm557_vm2, %v1435_v24  ;;  %v762_v17 = vpack.c.b16 %v757_v4, %v756_v3  ;;  %v1439_v18 = vor.u32 %v1470_v5, %v1438_v0  ;;  %v722_v19 = vshll.u32 %v1384_v6, 16  ;;  %v736_v20 = vshll.u32 %v1385_v9, 16  ;;  %v1452_v0 = vld [vmem:[%s332_s24] sm:$0xf]  ;;  %v1418_v6 = vld [vmem:[%s1607_s12 + $0x70] sm:$0xf] }
  0x45   : > { %v719_v21 = vor.u32 %v718_v10, %v715_v7  ;;  %v733_v22 = vor.u32 %v732_v12, %v729_v11  ;;  %v939_v23 = vrot.slane %v938_v13, 4  ;;  %v943_v24 = vrot.slane %v941_v14, 5 }
  0x46   : > { %v953_v25 = vrot.slane %v952_v15, 4  ;;  %v957_v26 = vrot.slane %v955_v16, 5  ;;  %v724_v29 = vrot.slane %v722_v19, 5  ;;  %v738_v30 = vrot.slane %v736_v20, 5  ;;  %v1141_v15 = vld [vmem:[%s332_s24] sm:$0xf] }
  0x47   : > { %v720_v32 = vrot.slane %v719_v21, 4  ;;  %v734_v33 = vrot.slane %v733_v22, 4  ;;  %v960_v35 = vshrl.u32 %v1416_v27, 16  ;;  %v963_v36 = vshll.u32 %v1416_v27, 16 }
  0x48   : > { %v944_v37 = vsel %vm1624_vm6, %v939_v23, %v943_v24  ;;  %v958_v38 = vsel %vm1624_vm6, %v953_v25, %v957_v26  ;;  %v974_v39 = vshrl.u32 %v1417_v28, 16  ;;  %v977_v40 = vshll.u32 %v1417_v28, 16 }
  0x49   : > { %v1407_v41 = vor.u32 %v1468_v34, %v1406_v31  ;;  %v725_v42 = vsel %vm1624_vm6, %v720_v32, %v724_v29  ;;  %v739_v44 = vsel %vm1624_vm6, %v734_v33, %v738_v30  ;;  %v1014_v45 = vunpack.c.l.b16 %v944_v37 }
  0x4a   : > { %v1015_v46 = vunpack.c.l.b16 %v958_v38  ;;  %v962_v47 = vrot.slane %v960_v35, 4  ;;  %v965_v48 = vrot.slane %v963_v36, 5  ;;  %v976_v49 = vrot.slane %v974_v39, 4 }
  0x4b   : > { %v979_v50 = vrot.slane %v977_v40, 5  ;;  %v758_v53 = vunpack.c.l.b16 %v725_v42  ;;  %v759_v54 = vunpack.c.l.b16 %v739_v44  ;;  %v983_v61 = vshll.u32 %v1424_v52, 16 }
  0x4c   : > { %1410 = vmatmul.msk.bf16.gmra.mxu3 %vm557_vm2, %v1403_v51  ;;  %v1423_v51 = vld [vmem:[%s1607_s12 + $0x54] sm:$0x1]  ;;  %v1020_v55 = vpack.c.b16 %v1015_v46, %v1014_v45  ;;  %v966_v58 = vor.u32 %v965_v48, %v962_v47  ;;  %v1443_v63 = vor.u32 %v1471_v57, %v1442_v56  ;;  %v1453_v7 = vor.u32 %v1472_v1, %v1452_v0  ;;  %v1780_v1 = vld [vmem:[%s1820_s4] ss:$0 sm:$0xff] }
  0x4d   : > { %v969_v59 = vshll.u32 %v1423_v51, 16  ;;  %v980_v60 = vor.u32 %v979_v50, %v976_v49  ;;  %v763_v62 = vpack.c.b16 %v759_v54, %v758_v53  ;;  %v985_v5 = vrot.slane %v983_v61, 5 }
  0x4e   : > { %v967_v2 = vrot.slane %v966_v58, 4  ;;  %v988_v10 = vshrl.u32 %v1418_v6, 16  ;;  %v991_v11 = vshll.u32 %v1418_v6, 16  ;;  %v1154_v12 = vshll.u32 %v1453_v7, 16 }
  0x4f   : > { %v971_v3 = vrot.slane %v969_v59, 5  ;;  %v981_v4 = vrot.slane %v980_v60, 4  ;;  %v1152_v19 = vshrl.u32 %v1453_v7, 16  ;;  %v1079_v21 = vunpack.c.l.b16 %v1418_v6 }
  0x50   : > { %1428 = vmatmul.msk.bf16.vlgmr.msrb.gmra.mxu0 %vm491_vm5, %v1019_v8  ;;  %v990_v16 = vrot.slane %v988_v10, 4  ;;  %v1156_v20 = vrot.slane %v1154_v12, 1 }
  0x51   : > { %v972_v8 = vsel %vm1624_vm6, %v967_v2, %v971_v3  ;;  %v986_v9 = vsel %vm1624_vm6, %v981_v4, %v985_v5  ;;  %v1083_v26 = vpack.c.b16 %v1079_v21, %v1079_v21 }
  0x52   : > { %v1016_v13 = vunpack.c.l.b16 %v972_v8  ;;  %v1017_v14 = vunpack.c.l.b16 %v986_v9  ;;  %v1157_v25 = vor.u32 %v1156_v20, %v1152_v19 }
  0x54   : > { %1390 = vmatmul.msk.bf16.gmra.mxu2 %vm491_vm5, %v762_v17  ;;  %1445 = vmatmul.msk.bf16.gmra.mxu1 %vm557_vm2, %v1439_v18  ;;  %v993_v17 = vrot.slane %v991_v11, 5  ;;  %v1425_v18 = vld [vmem:[%s1607_s12 + $0x74] sm:$0x1]  ;;  %v1021_v22 = vpack.c.b16 %v1017_v14, %v1016_v13 }
  0x55   : > { %v997_v24 = vshll.u32 %v1425_v18, 16 }
  0x56   : > { %v994_v23 = vor.u32 %v993_v17, %v990_v16 }
  0x57   : > { %v999_v28 = vrot.slane %v997_v24, 5 }
  0x58   : > { %v995_v27 = vrot.slane %v994_v23, 4 }
  0x5a   : > { %v1000_v29 = vsel %vm1624_vm6, %v995_v27, %v999_v28 }
  0x5b   : > { %v1018_v30 = vunpack.c.l.b16 %v1000_v29 }
  0x5c   : > { %1411 = vmatmul.msk.bf16.gmra.mxu3 %vm557_vm2, %v1407_v41 }
  0x5d   : > { %v1022_v31 = vpack.c.b16 %v1018_v30, %v1018_v30 }
  0x60   : > { %1429 = vmatmul.msk.bf16.gmra.mxu0 %vm491_vm5, %v1020_v55 }
  0x64   : > { %1391 = vmatmul.msk.bf16.gmra.mxu2 %vm491_vm5, %v763_v62  ;;  %1446 = vmatmul.msk.bf16.gmra.mxu1 %vm557_vm2, %v1443_v63 }
  0x6c   : > { %1455 = vmatmul.msk.bf16.vlgmr.msra.gmra.mxu3 %vm557_vm2, %v1141_v15 }
  0x70   : > { %1430 = vmatmul.msk.bf16.gmra.mxu0 %vm491_vm5, %v1021_v22 }
  0x74   : > { %1454 = vmatmul.msk.bf16.vlgmr.msra.gmra.mxu2 %vm491_vm5, %v1157_v25  ;;  %1447 = vmatmul.msk.bf16.gmra.mxu1 %vm557_vm2, %v1083_v26 }
  0x80   : > { %1431 = vmatmul.msk.bf16.gmra.mxu0 %vm491_vm5, %v1022_v31 }
  0x91   : > { %v583_v32 = vpop.f32.mrf.mxu1 }
  0x99   : > { %v585_v33 = vpop.f32.mrf.mxu1 }
  0x9d   : > { %v517_v34 = vpop.f32.mrf.mxu0 }
  0x9e   : > { %v584_v60 = vadd.f32 %v583_v32, %v517_v34 }
  0x9f   : > { %v598_v35 = vpop.f32.mrf.mxu3 }
  0xa1   : > { %v588_v36 = vpop.f32.mrf.mxu1 }
  0xa5   : > { %v519_v37 = vpop.f32.mrf.mxu0 }
  0xa6   : > { %v586_v7 = vadd.f32 %v585_v33, %v519_v37 }
  0xa7   : > { %v532_v38 = vpop.f32.mrf.mxu2  ;;  %v600_v39 = vpop.f32.mrf.mxu3 }
  0xa8   : > { %v1768_v40 = vadd.f32 %v598_v35, %v532_v38 }
  0xa9   : > { %v590_v41 = vpop.f32.mrf.mxu1 }
  0xad   : > { %v522_v42 = vpop.f32.mrf.mxu0 }
  0xae   : > { %v589_v17 = vadd.f32 %v588_v36, %v522_v42 }
  0xaf   : > { %v534_v44 = vpop.f32.mrf.mxu2  ;;  %v852_v45 = vpop.f32.mrf.mxu3 }
  0xb0   : > { %v1770_v43 = vadd.f32 %v600_v39, %v534_v44 }
  0xb1   : > { %v593_v46 = vpop.f32.mrf.mxu1 }
  0xb5   : > { %v524_v47 = vpop.f32.mrf.mxu0 }
  0xb6   : > { %v591_v27 = vadd.f32 %v590_v41, %v524_v47 }
  0xb7   : > { %v788_v48 = vpop.f32.mrf.mxu2  ;;  %v854_v49 = vpop.f32.mrf.mxu3 }
  0xb8   : > { %v853_v59 = vadd.f32 %v852_v45, %v788_v48 }
  0xb9   : > { %v1772_v50 = vpop.f32.mrf.mxu1 }
  0xba   : > { %v872_v62 = vadd.f32 %v853_v59, %v584_v60 }
  0xbd   : > { %v527_v51 = vpop.f32.mrf.mxu0 }
  0xbe   : > { %v594_v37 = vadd.f32 %v593_v46, %v527_v51 }
  0xbf   : > { %v790_v52 = vpop.f32.mrf.mxu2  ;;  %v857_v53 = vpop.f32.mrf.mxu3 }
  0xc0   : > { %v855_v5 = vadd.f32 %v854_v49, %v790_v52 }
  0xc1   : > { %v1108_v54 = vpop.f32.mrf.mxu1 }
  0xc2   : > { %v873_v9 = vadd.f32 %v855_v5, %v586_v7 }
  0xc5   : > { %v1774_v55 = vpop.f32.mrf.mxu0 }
  0xc7   : > { %v793_v56 = vpop.f32.mrf.mxu2  ;;  %v859_v57 = vpop.f32.mrf.mxu3 }
  0xc8   : > { %v858_v15 = vadd.f32 %v857_v53, %v793_v56  ;;  %v596_v53 = vadd.f32 %v1772_v50, %v1774_v55 }
  0xc9   : > { %v1110_v58 = vpop.f32.mrf.mxu1 }
  0xca   : > { %v874_v19 = vadd.f32 %v858_v15, %v589_v17 }
  0xcd   : > { %v1047_v61 = vpop.f32.mrf.mxu0 }
  0xce   : > { %v1109_v0 = vadd.f32 %v1108_v54, %v1047_v61 }
  0xcf   : > { %v795_v63 = vpop.f32.mrf.mxu2  ;;  %v862_v2 = vpop.f32.mrf.mxu3 }
  0xd0   : > { %v1127_v3 = vadd.f32 %v1109_v0, %v872_v62  ;;  %v860_v25 = vadd.f32 %v859_v57, %v795_v63 }
  0xd1   : > { %v1113_v4 = vpop.f32.mrf.mxu1 }
  0xd2   : > { %v1210_v6 = vadd.f32 %v1780_v1, %v1127_v3  ;;  %v875_v29 = vadd.f32 %v860_v25, %v591_v27 }
  0xd4   : > { %1218 = vst [vmem:[%s1785_s30] sm:$0xff] %v1210_v6 }
  0xd5   : > { %v1049_v8 = vpop.f32.mrf.mxu0 }
  0xd6   : > { %v1111_v11 = vadd.f32 %v1110_v58, %v1049_v8 }
  0xd7   : > { %v798_v10 = vpop.f32.mrf.mxu2  ;;  %v864_v12 = vpop.f32.mrf.mxu3 }
  0xd8   : > { %v1128_v13 = vadd.f32 %v1111_v11, %v873_v9  ;;  %v863_v35 = vadd.f32 %v862_v2, %v798_v10 }
  0xd9   : > { %v1115_v14 = vpop.f32.mrf.mxu1 }
  0xda   : > { %v1211_v16 = vadd.f32 %v1780_v1, %v1128_v13  ;;  %v876_v39 = vadd.f32 %v863_v35, %v594_v37 }
  0xdc   : > { %1219 = vst [vmem:[%s1785_s30 + $0x8] sm:$0xff] %v1211_v16 }
  0xdd   : > { %v1052_v18 = vpop.f32.mrf.mxu0 }
  0xde   : > { %v1114_v21 = vadd.f32 %v1113_v4, %v1052_v18 }
  0xdf   : > { %v800_v20 = vpop.f32.mrf.mxu2  ;;  %v867_v22 = vpop.f32.mrf.mxu3 }
  0xe0   : > { %v1129_v23 = vadd.f32 %v1114_v21, %v874_v19  ;;  %v865_v48 = vadd.f32 %v864_v12, %v800_v20 }
  0xe1   : > { %v1118_v24 = vpop.f32.mrf.mxu1 }
  0xe2   : > { %v1212_v26 = vadd.f32 %v1780_v1, %v1129_v23  ;;  %v877_v46 = vadd.f32 %v865_v48, %v596_v53 }
  0xe4   : > { %1220 = vst [vmem:[%s1785_s30 + $0x10] sm:$0xff] %v1212_v26 }
  0xe5   : > { %v1054_v28 = vpop.f32.mrf.mxu0 }
  0xe6   : > { %v1116_v31 = vadd.f32 %v1115_v14, %v1054_v28 }
  0xe7   : > { %v803_v30 = vpop.f32.mrf.mxu2  ;;  %v869_v32 = vpop.f32.mrf.mxu3 }
  0xe8   : > { %v1130_v33 = vadd.f32 %v1116_v31, %v875_v29  ;;  %v868_v63 = vadd.f32 %v867_v22, %v803_v30 }
  0xe9   : > { %v1120_v34 = vpop.f32.mrf.mxu1 }
  0xea   : > { %v1213_v36 = vadd.f32 %v1780_v1, %v1130_v33  ;;  %v878_v55 = vadd.f32 %v868_v63, %v1768_v40 }
  0xec   : > { %1221 = vst [vmem:[%s1785_s30 + $0x18] sm:$0xff] %v1213_v36 }
  0xed   : > { %v1057_v38 = vpop.f32.mrf.mxu0 }
  0xee   : > { %v1119_v44 = vadd.f32 %v1118_v24, %v1057_v38 }
  0xef   : > { %v805_v42 = vpop.f32.mrf.mxu2  ;;  %v1192_v45 = vpop.f32.mrf.mxu3 }
  0xf0   : > { %v1131_v41 = vadd.f32 %v1119_v44, %v876_v39  ;;  %v870_v52 = vadd.f32 %v869_v32, %v805_v42 }
  0xf1   : > { %v1123_v47 = vpop.f32.mrf.mxu1 }
  0xf2   : > { %v1214_v49 = vadd.f32 %v1780_v1, %v1131_v41  ;;  %v879_v58 = vadd.f32 %v870_v52, %v1770_v43 }
  0xf4   : > { %1222 = vst [vmem:[%s1785_s30 + $0x20] sm:$0xff] %v1214_v49 }
  0xf5   : > { %v1059_v54 = vpop.f32.mrf.mxu0 }
  0xf6   : > { %v1121_v56 = vadd.f32 %v1120_v34, %v1059_v54 }
  0xf7   : > { %v1173_v51 = vpop.f32.mrf.mxu2  ;;  %v1194_v57 = vpop.f32.mrf.mxu3 }
  0xf8   : > { %v1193_v59 = vadd.f32 %v1192_v45, %v1173_v51  ;;  %v1132_v60 = vadd.f32 %v1121_v56, %v877_v46 }
  0xf9   : > { %v1125_v61 = vpop.f32.mrf.mxu1 }
  0xfa   : > { %v1196_v62 = vadd.f32 %v1193_v59, %v879_v58  ;;  %v1215_v0 = vadd.f32 %v1780_v1, %v1132_v60 }
  0xfc   : > { %v1217_v2 = vadd.f32 %v1780_v1, %v1196_v62  ;;  %1223 = vst [vmem:[%s1785_s30 + $0x28] sm:$0xff] %v1215_v0 }
  0xfd   : > { %v1062_v50 = vpop.f32.mrf.mxu0 }
  0xfe   : > { %1225 = vst [vmem:[%s1785_s30 + $0x38] sm:$0xff] %v1217_v2  ;;  %v1124_v3 = vadd.f32 %v1123_v47, %v1062_v50 }
  0xff   : > { %v1175_v4 = vpop.f32.mrf.mxu2 }
 0x100   : > { %v1133_v5 = vadd.f32 %v1124_v3, %v878_v55 }
 0x102   : > { %v1216_v43 = vadd.f32 %v1780_v1, %v1133_v5 }
 0x104   : > { %1224 = vst [vmem:[%s1785_s30 + $0x30] sm:$0xff] %v1216_v43 }
 0x105   : > { %v1064_v6 = vpop.f32.mrf.mxu0 }
 0x106 PF: > { %s15_s20 = sadd.s32 1, %s1525_s20   ;;  %s1824_s18 = smov %s1521_s19 }
 0x107   : > { %p12_p5 = scmp.ge.s32.totalorder %s15_s20, 4   ;;  %s1825_s19 = smov %s1827_s21 }
 0x109   :  { %14 = sbr.rel (!%p12_p5) target bundleno = 2 (0x2), region = 79 }

</bundles_post_ra>
